<compile_context>
chip_gen: v5e
topology: v5e:2x2
jax: 0.10.0
libtpu: 0.0.40
codegen_flags: <defaults>
</compile_context>

<pallas_src>
import functools

import jax
import jax.numpy as jnp
from jax.experimental import pallas as pl
from jax.experimental.pallas import tpu as pltpu


# --------------------------------------------------------------------------
# Kernel
# --------------------------------------------------------------------------
def _add_coordconv_kernel(x_ref, o_ref, *, s_tile, uv_chunk, H, W,
                          u_min, u_max, v_min, v_max):
    """x_ref: (b_blk, C, s_tile)  o_ref: (b_blk, C + 2, s_tile).

    The last axis is the flattened H*W spatial axis (lane axis), so all
    stores are lane-dense even for W < 128.
    """
    b_blk = o_ref.shape[0]
    base = pl.program_id(1) * s_tile          # first global flat index of tile
    w_pow2 = (W & (W - 1)) == 0               # static Python bool

    def write_uv(start, chunk):
        flat = jax.lax.broadcasted_iota(jnp.int32, (1, chunk), 1) + (base + start)
        if w_pow2:
            # exact shift/mask decomposition
            col = (flat & (W - 1)).astype(jnp.float32)
            row = (flat >> (W.bit_length() - 1)).astype(jnp.float32)
        else:
            # exact f32 floor-divide for H*W < ~8M (flat + 0.5 keeps the
            # quotient strictly inside (row, row+1) so floor is exact)
            flat_f = flat.astype(jnp.float32)
            row = jnp.floor((flat_f + 0.5) * (1.0 / W))
            col = flat_f - row * W

        # u: ramp u_min -> u_max along width;  v: ramp v_max -> v_min along height
        u = u_min + (u_max - u_min) * (1.0 / (W - 1)) * col
        v = v_max + (v_min - v_max) * (1.0 / (H - 1)) * row

        u3 = jnp.broadcast_to(u[None], (b_blk, 1, chunk)).astype(o_ref.dtype)
        v3 = jnp.broadcast_to(v[None], (b_blk, 1, chunk)).astype(o_ref.dtype)
        idx = pl.ds(start, chunk)
        o_ref[:, 0:1, idx] = u3
        o_ref[:, 1:2, idx] = v3

    n_chunks = s_tile // uv_chunk
    if n_chunks == 1:
        write_uv(0, s_tile)
    else:
        @pl.loop(0, n_chunks)
        def _(ci):
            write_uv(pl.multiple_of(ci * uv_chunk, uv_chunk), uv_chunk)

    # Bulk lane-dense copy of the feature channels into output channels [2:).
    if x_ref.shape[1] > 0:
        o_ref[:, 2:, :] = x_ref[...]


# --------------------------------------------------------------------------
# Trace-time planning (block sizes, VMEM limit)
# --------------------------------------------------------------------------
def _largest_aligned_divisor(S, max_elems):
    """Largest t with t % 128 == 0, S % t == 0 and t <= max_elems (else None)."""
    t = (min(S, max_elems) // 128) * 128
    while t >= 128:
        if S % t == 0:
            return t
        t -= 128
    return None


def _uv_chunk(s_tile):
    """Chunk size (lanes) for in-kernel UV generation; must divide s_tile."""
    for c in (4096, 2048, 1024, 512, 256, 128):
        if s_tile % c == 0:
            return c
    return s_tile


def _plan(B, C, H, W, itemsize):
    """Return (batch_block, spatial_tile, vmem_limit_bytes)."""
    S = H * W
    sm = max(8, 32 // itemsize)               # sublane multiple: 8 f32 / 16 bf16 / 32 i8
    rup = lambda n, m: -(-n // m) * m
    cin, cout = rup(C, sm), rup(C + 2, sm)    # padded channel counts (in / out)
    lane = lambda n: rup(n, 128)              # lane padding

    try:
        phys = pltpu.get_tpu_info().vmem_capacity_bytes
    except Exception:                          # interpret mode / older runtimes
        phys = 64 << 20                        # conservative (v7x-sized) default
    # Explicit scoped-VMEM limit: ~64 MiB on v5e/v6e (128 MiB phys), ~38 MiB on
    # v7x (64 MiB phys).  Avoids the v5e 16 MiB default cliff.
    vmem_limit = int(min(64 << 20, int(phys * 0.6)))
    # Per-block (in + out) budget; Pallas double-buffers both, leave headroom.
    block_budget = vmem_limit // 4

    def io_bytes(b_blk, s_tile):
        return b_blk * (cin + cout) * lane(s_tile) * itemsize

    # Tiny inputs: pay the per-step overhead exactly once (fold batch in).
    if io_bytes(B, S) <= min(block_budget, 2 << 20):
        return B, S, vmem_limit

    # One batch element per block; tile the flat spatial axis if needed.
    per_batch = io_bytes(1, S)
    if per_batch <= block_budget:
        s_tile = S
        if B == 1:
            # Keep >= 2 parallel tiles so both v7x TensorCores share the copy.
            t = _largest_aligned_divisor(S, S // 2)
            if t is not None:
                s_tile = t
        return 1, s_tile, vmem_limit

    max_lanes = max(128, block_budget // ((cin + cout) * itemsize))
    t = _largest_aligned_divisor(S, max_lanes)
    if t is None:
        # No lane-aligned divisor fits: fall back to the whole spatial plane
        # and raise the limit as far as the chip allows.
        vmem_limit = int(min(int(phys * 0.9),
                             max(vmem_limit, int(per_batch * 2.5))))
        return 1, S, vmem_limit
    return 1, t, vmem_limit


# --------------------------------------------------------------------------
# Public wrapper
# --------------------------------------------------------------------------
def add_coordconv(x: jax.Array,
                  u_max: float = 1.0, u_min: float = -1.0,
                  v_max: float = 1.0, v_min: float = -1.0) -> jax.Array:
    """Pallas wrapper: (B, C, H, W) -> (B, C + 2, H, W) with UV channels first."""
    B, C, H, W = x.shape
    assert H == W, "AddCoordConv assumes square spatial dims (res = shape[2])"
    assert H >= 2, "need at least 2x2 spatial extent for the UV ramp"

    S = H * W
    itemsize = jnp.dtype(x.dtype).itemsize
    b_blk, s_tile, vmem_limit = _plan(B, C, H, W, itemsize)
    grid = (B // b_blk, S // s_tile)

    kernel = functools.partial(
        _add_coordconv_kernel,
        s_tile=s_tile, uv_chunk=_uv_chunk(s_tile), H=H, W=W,
        u_min=float(u_min), u_max=float(u_max),
        v_min=float(v_min), v_max=float(v_max),
    )

    x_flat = x.reshape(B, C, S)                       # free: memory is contiguous
    out_flat = pl.pallas_call(
        kernel,
        out_shape=jax.ShapeDtypeStruct((B, C + 2, S), x.dtype),
        grid=grid,
        in_specs=[
            pl.BlockSpec((b_blk, C, s_tile), lambda b, s: (b, 0, s)),
        ],
        out_specs=pl.BlockSpec((b_blk, C + 2, s_tile), lambda b, s: (b, 0, s)),
        compiler_params=pltpu.CompilerParams(
            dimension_semantics=("parallel", "parallel"),
            vmem_limit_bytes=vmem_limit,
        ),
    )(x_flat)
    return out_flat.reshape(B, C + 2, H, W)


# --------------------------------------------------------------------------
# Pure-JAX reference (mirrors torch bilinear align_corners=True on a 2x2 grid)
# --------------------------------------------------------------------------
def add_coordconv_ref(x: jax.Array,
                      u_max: float = 1.0, u_min: float = -1.0,
                      v_max: float = 1.0, v_min: float = -1.0) -> jax.Array:
    B, C, H, W = x.shape
    res = H
    j = jnp.arange(res, dtype=jnp.float32)
    u_row = u_min + (u_max - u_min) * j / (res - 1)          # along width
    v_col = v_max + (v_min - v_max) * j / (res - 1)          # along height
    u = jnp.broadcast_to(u_row[None, :], (res, res))
    v = jnp.broadcast_to(v_col[:, None], (res, res))
    grid = jnp.stack([u, v], axis=0)                          # (2, res, res)
    grid = jnp.broadcast_to(grid[None], (B, 2, res, res)).astype(x.dtype)
    return jnp.concatenate([grid, x], axis=1)


if __name__ == "__main__":
    key = jax.random.PRNGKey(0)

    # Primary shape consistent with the module: batch=2, channels=4, res=16
    x = jax.random.normal(key, (2, 4, 16, 16), dtype=jnp.float32)
    out = jax.block_until_ready(add_coordconv(x))
    ref = add_coordconv_ref(x)
    assert out.shape == (2, 6, 16, 16), out.shape
    assert out.dtype == x.dtype
    assert jnp.allclose(out, ref, atol=1e-6), "Pallas output does not match reference"

    # Secondary small check exercising the non-power-of-two width path.
    x2 = jax.random.normal(jax.random.PRNGKey(0), (1, 3, 12, 12), dtype=jnp.float32)
    out2 = jax.block_until_ready(add_coordconv(x2))
    ref2 = add_coordconv_ref(x2)
    assert out2.shape == (1, 5, 12, 12), out2.shape
    assert jnp.allclose(out2, ref2, atol=1e-6), "non-pow2-W path mismatch"

    print("KERNEL_OK")
</pallas_src>

<mosaic_0001>
module attributes {stable_mosaic.version = 11 : i64} {
  func.func @_add_coordconv_kernel(%arg0: i32, %arg1: i32, %arg2: memref<2x4x256xf32, #tpu.memory_space<vmem>>, %arg3: memref<2x6x256xf32, #tpu.memory_space<vmem>>) attributes {dimension_semantics = [#tpu.dimension_semantics<parallel>, #tpu.dimension_semantics<parallel>], iteration_bounds = array<i64: 1, 1>, scalar_prefetch = 0 : i64, scratch_operands = 0 : i64, tpu.core_type = #tpu.core_type<tc>, window_params = [{transform_indices = @transform_0, window_bounds = array<i64: 2, 4, 256>}, {transform_indices = @transform_1, window_bounds = array<i64: 2, 6, 256>}]} {
    %c256_i32 = arith.constant 256 : i32
    %0 = arith.muli %arg1, %c256_i32 : i32
    %1 = tpu.iota {dimensions = array<i32: 1>} : vector<1x256xi32>
    %c0_i32 = arith.constant 0 : i32
    %2 = arith.addi %0, %c0_i32 : i32
    %3 = vector.broadcast %2 : i32 to vector<1x256xi32>
    %4 = arith.addi %1, %3 : vector<1x256xi32>
    %c15_i32 = arith.constant 15 : i32
    %5 = vector.broadcast %c15_i32 : i32 to vector<1x256xi32>
    %6 = arith.andi %4, %5 : vector<1x256xi32>
    %7 = arith.sitofp %6 : vector<1x256xi32> to vector<1x256xf32>
    %c4_i32 = arith.constant 4 : i32
    %8 = vector.broadcast %c4_i32 : i32 to vector<1x256xi32>
    %9 = arith.shrsi %4, %8 : vector<1x256xi32>
    %10 = arith.sitofp %9 : vector<1x256xi32> to vector<1x256xf32>
    %cst = arith.constant 0.13333334 : f32
    %11 = vector.broadcast %cst : f32 to vector<1x256xf32>
    %12 = arith.mulf %11, %7 : vector<1x256xf32>
    %cst_0 = arith.constant -1.000000e+00 : f32
    %13 = vector.broadcast %cst_0 : f32 to vector<1x256xf32>
    %14 = arith.addf %13, %12 : vector<1x256xf32>
    %cst_1 = arith.constant -0.13333334 : f32
    %15 = vector.broadcast %cst_1 : f32 to vector<1x256xf32>
    %16 = arith.mulf %15, %10 : vector<1x256xf32>
    %cst_2 = arith.constant 1.000000e+00 : f32
    %17 = vector.broadcast %cst_2 : f32 to vector<1x256xf32>
    %18 = arith.addf %17, %16 : vector<1x256xf32>
    %19 = vector.shape_cast %14 : vector<1x256xf32> to vector<1x1x256xf32>
    %20 = vector.shape_cast %19 : vector<1x1x256xf32> to vector<1x1x256xf32>
    %21 = vector.broadcast %20 : vector<1x1x256xf32> to vector<2x1x256xf32>
    %22 = vector.shape_cast %18 : vector<1x256xf32> to vector<1x1x256xf32>
    %23 = vector.shape_cast %22 : vector<1x1x256xf32> to vector<1x1x256xf32>
    %24 = vector.broadcast %23 : vector<1x1x256xf32> to vector<2x1x256xf32>
    %c0 = arith.constant 0 : index
    %c0_3 = arith.constant 0 : index
    %c0_4 = arith.constant 0 : index
    %25 = vector.load %arg3[%c0, %c0_3, %c0_4] : memref<2x6x256xf32, #tpu.memory_space<vmem>>, vector<2x1x256xf32>
    tpu.vector_store %arg3[%c0, %c0_3, %c0_4], %21 {strides = array<i32>} : memref<2x6x256xf32, #tpu.memory_space<vmem>>, vector<2x1x256xf32>,
    %c0_5 = arith.constant 0 : index
    %c1 = arith.constant 1 : index
    %c0_6 = arith.constant 0 : index
    %26 = vector.load %arg3[%c0_5, %c1, %c0_6] : memref<2x6x256xf32, #tpu.memory_space<vmem>>, vector<2x1x256xf32>
    tpu.vector_store %arg3[%c0_5, %c1, %c0_6], %24 {strides = array<i32>} : memref<2x6x256xf32, #tpu.memory_space<vmem>>, vector<2x1x256xf32>,
    %c0_7 = arith.constant 0 : index
    %c0_8 = arith.constant 0 : index
    %c0_9 = arith.constant 0 : index
    %27 = vector.load %arg2[%c0_7, %c0_8, %c0_9] : memref<2x4x256xf32, #tpu.memory_space<vmem>>, vector<2x4x256xf32>
    %c0_10 = arith.constant 0 : index
    %c2 = arith.constant 2 : index
    %c0_11 = arith.constant 0 : index
    %28 = vector.load %arg3[%c0_10, %c2, %c0_11] : memref<2x6x256xf32, #tpu.memory_space<vmem>>, vector<2x4x256xf32>
    tpu.vector_store %arg3[%c0_10, %c2, %c0_11], %27 {strides = array<i32>} : memref<2x6x256xf32, #tpu.memory_space<vmem>>, vector<2x4x256xf32>,
    return
  }
  func.func @transform_0(%arg0: i32, %arg1: i32) -> (i32, i32, i32) {
    %c0_i32 = arith.constant 0 : i32
    %c0_i32_0 = arith.constant 0 : i32
    return %arg0, %c0_i32, %arg1 : i32, i32, i32
  }
  func.func @transform_1(%arg0: i32, %arg1: i32) -> (i32, i32, i32) {
    %c0_i32 = arith.constant 0 : i32
    %c0_i32_0 = arith.constant 0 : i32
    return %arg0, %c0_i32, %arg1 : i32, i32, i32
  }
}

</mosaic_0001>

<bundles_post_ra>
// kernel: tpu_custom_call.1
= control target key start
LH: loop header
LB: loop body
LE: loop exit
PB: predicated region body
PF: predicated region fallthrough
CT: control target
= control target key end

     0   :  { %6 = vsyncpa [#allocation3], 0  ;;  %s133_s9 = smov [#allocation2]   ;;  %s134_s11 = smov 128   ;;  %s173_s0 = inlined_call_operand.hbm [shape: f32[2,4,256], index: 0, kind: input, shape index: {}]   ;;  %s174_s1 = inlined_call_operand.vmem [shape: f32[2,6,256], index: 1, kind: output, shape index: {}]  }
   0x1   :  { %s11_s8 = sshll.u32 %s173_s0, 4  ;;  %s13_s10 = sshll.u32 %s133_s9, 4  ;;  %s12_s8 = int_to_ptr.hbm [resolvable:$true] %s11_s8  ;;  %s14_s10 = int_to_ptr.vmem [resolvable:$true] %s13_s10 }
   0x2   :  { %s135_s12 = smov 8  }
   0x3   :  { %19 = dma.hbm_to_vmem [thread:$0]  %s12_s8, 256, %s14_s10, [#allocation3], %s134_s11, %s134_s11, %s135_s12  }
   0x4   :  { %131 = dma.done.wait [#allocation3], 256  }
   0x5   :  { %132 = vsyncadd [#allocation3], 4294967040  ;;  %v25_v0 = vlaneseq  ;;  %v73_v9 = vld [vmem:[#allocation2] sm:$0xff]  ;;  %v74_v10 = vld [vmem:[#allocation2 + $0x8] sm:$0xff]  ;;  %vm50_vm0 = vcmask 1040384  }
   0x6   :  { %77 = vst [vmem:[#allocation1] ss:$2 sm:$0xff] %v73_v9 }
   0x7   :  { %v26_v1 = vand.u32 127, %v25_v0  ;;  %81 = vst [vmem:[#allocation1 + $0x10] ss:$2 sm:$0xff] %v74_v10  ;;  %vm55_vm1 = vcmp.lt.s32.totalorder %v25_v0, 256 }
   0x9   :  { %v27_v2 = vadd.s32 128, %v26_v1  ;;  %v31_v3 = vand.u32 15, %v26_v1  ;;  %v35_v4 = vshra.s32 %v26_v1, 4 }
   0xb   :  { %v32_v5 = vand.u32 15, %v27_v2  ;;  %v33_v6 = vcvt.s32.f32 %v31_v3  ;;  %v36_v7 = vshra.s32 %v27_v2, 4  ;;  %v37_v8 = vcvt.s32.f32 %v35_v4 }
   0xd   :  { %v34_v11 = vcvt.s32.f32 %v32_v5  ;;  %v39_v12 = vmul.f32 0.13333334, %v33_v6  ;;  %v38_v13 = vcvt.s32.f32 %v36_v7  ;;  %v43_v14 = vmul.f32 -0.13333334, %v37_v8 }
   0xe   :  { %v78_v23 = vld.sshfl [vmem:[#allocation1] sm:$0xff pattern:$0x75316420]  ;;  %v79_v24 = vld.sshfl [vmem:[#allocation1 + $0x8] sm:$0xff pattern:$0x75316420] }
   0xf   :  { %v40_v15 = vmul.f32 0.13333334, %v34_v11  ;;  %v44_v16 = vmul.f32 -0.13333334, %v38_v13  ;;  %v41_v17 = vadd.f32 -1.0, %v39_v12  ;;  %v45_v19 = vadd.f32 1.0, %v43_v14 }
  0x10   :  { %v82_v27 = vld.sshfl [vmem:[#allocation1 + $0x10] sm:$0xff pattern:$0x75316420]  ;;  %v84_v28 = vrot.slane %v78_v23, 6  ;;  %v85_v29 = vrot.slane %v79_v24, 6 }
  0x11   :  { %v42_v18 = vadd.f32 -1.0, %v40_v15  ;;  %v46_v20 = vadd.f32 1.0, %v44_v16  ;;  %v83_v30 = vld.sshfl [vmem:[#allocation1 + $0x18] sm:$0xff pattern:$0x75316420]  ;;  %v86_v31 = vrot.slane %v82_v27, 6 }
  0x12   :  { %v87_v32 = vrot.slane %v83_v30, 6  ;;  %92 = vst [vmem:[%s174_s1] sm:$0x3c] %v84_v28 }
  0x13   :  { %v49_v21 = vrot.slane %v42_v18, 7  ;;  %v64_v22 = vrot.slane %v46_v20, 7  ;;  %93 = vst [vmem:[%s174_s1 + $0x8] sm:$0x3c] %v85_v29 }
  0x14   :  { %94 = vst [vmem:[%s174_s1 + $0x10] sm:$0x3c] %v86_v31 }
  0x15   :  { %v51_v25 = vsel %vm50_vm0, %v41_v17, %v49_v21  ;;  %v65_v26 = vsel %vm50_vm0, %v45_v19, %v64_v22  ;;  %95 = vst [vmem:[%s174_s1 + $0x18] sm:$0x3c] %v87_v32 }
  0x16   :  { %57 = vst.msk [vmem:[%s174_s1] ss:$8 sm:$0x3] %vm55_vm1, %v51_v25 }
  0x17   :  { %101 = vst.msk [vmem:[%s174_s1 + $0x10] ss:$8 sm:$0x3] %vm55_vm1, %v51_v25 }
  0x18   :  { %102 = vst.msk [vmem:[%s174_s1 + $0x1] ss:$8 sm:$0x3] %vm55_vm1, %v65_v26 }
  0x19   :  { %103 = vst.msk [vmem:[%s174_s1 + $0x11] ss:$8 sm:$0x3] %vm55_vm1, %v65_v26 }
  0x1a   :  { %100 = vsyncpa [#allocation3], 1 }

</bundles_post_ra>
